<compile_context>
chip_gen: v7x
topology: tpu7x:2x2x1
jax: 0.10.0
libtpu: 0.0.40
codegen_flags: <defaults>
</compile_context>

<pallas_src>
import functools

import jax
import jax.numpy as jnp
from jax import lax
from jax.experimental import pallas as pl
from jax.experimental.pallas import tpu as pltpu

_NEG_LARGE = -1.0e30  # finite "-inf" so exp(m_prev - m_new) is exactly 0 on block 0


def _gram(anchor_ref, contrast_ref):
    # bf16 x bf16 -> f32 on the MXU; contraction on dim 1 of both (no transpose).
    # 1/temperature is already folded into the anchor operand by the wrapper.
    return lax.dot_general(
        anchor_ref[...], contrast_ref[...],
        dimension_numbers=(((1,), (1,)), ((), ())),
        preferred_element_type=jnp.float32,
    )


def _online_step(s, pos, cnt_ref, out_ref, m_ref, l_ref, p_ref, scale):
    i = pl.program_id(0)          # anchor row block ("parallel")
    j = pl.program_id(1)          # contrast column block (reduction axis, "arbitrary")

    @pl.when(j == 0)
    def _init():
        m_ref[...] = jnp.full(m_ref.shape, _NEG_LARGE, dtype=jnp.float32)
        l_ref[...] = jnp.zeros_like(l_ref)
        p_ref[...] = jnp.zeros_like(p_ref)

    # Self-contrast (diagonal) removal as an arithmetic predicate: with TM == TN and
    # tile | bsz, the global diagonal only intersects i == j tiles.
    rows = lax.broadcasted_iota(jnp.int32, s.shape, 0)
    cols = lax.broadcasted_iota(jnp.int32, s.shape, 1)
    drop = jnp.logical_and(i == j, rows == cols)

    m_prev = m_ref[...]                                       # [TM, 1]
    m_new = jnp.maximum(m_prev, jnp.max(s, axis=1, keepdims=True))
    e = jnp.where(drop, 0.0, jnp.exp(s - m_new))              # masked exp (single EUP stream)
    pos_eff = jnp.where(drop, 0.0, pos)

    # Online masked logsumexp accumulation.
    l_ref[...] = l_ref[...] * jnp.exp(m_prev - m_new) + jnp.sum(e, axis=1, keepdims=True)
    # UNSHIFTED positive-logit sum: plain f32 accumulation, no rescale, no m_new dep.
    p_ref[...] = p_ref[...] + jnp.sum(pos_eff * s, axis=1, keepdims=True)
    m_ref[...] = m_new

    @pl.when(j == pl.num_programs(1) - 1)
    def _finalize():
        # mean_log_prob_pos = sum(pos * log_prob)/cnt = p/cnt - (m + log l).
        # NOTE: rows with zero positives give 0/0 -> NaN, exactly matching the
        # PyTorch reference's hazard (intentionally not guarded).
        mlpp = p_ref[...] / cnt_ref[...] - m_ref[...] - jnp.log(l_ref[...])
        out_ref[...] = (-scale) * mlpp


def _supcon_kernel_mask(anchor_ref, contrast_ref, mask_ref, cnt_ref, out_ref,
                        m_ref, l_ref, p_ref, *, scale):
    s = _gram(anchor_ref, contrast_ref)
    pos = mask_ref[...].astype(jnp.float32)                   # int8/f32 -> f32
    _online_step(s, pos, cnt_ref, out_ref, m_ref, l_ref, p_ref, scale)


def _supcon_kernel_labels(anchor_ref, contrast_ref, la_ref, lc_ref, cnt_ref, out_ref,
                          m_ref, l_ref, p_ref, *, scale):
    s = _gram(anchor_ref, contrast_ref)
    # Positives built in-kernel: (tile,1) anchor labels vs (1,tile) contrast labels.
    pos = (la_ref[...] == lc_ref[...]).astype(jnp.float32)
    _online_step(s, pos, cnt_ref, out_ref, m_ref, l_ref, p_ref, scale)


def _pick_tile(bsz, n_views):
    """Returns (tile, need_dense_mask). tile == TM == TN; tile | (bsz * n_views)."""
    # tile=128 is the generation-safe choice: v5e's MXU is 4x128x128 with a single
    # vector-store slot (256-wide tiles just add [256,256] f32 intermediates), and
    # v7x has only 64 MiB VMEM; it also keeps grid_i >= 2 for mid-size problems
    # (v7x megacore).  TODO(synk): 256-wide N tiles on v6e.
    if bsz % 128 == 0:
        return 128, False
    # Small-batch path: one block spans all bsz rows of a view (bf16-tile friendly).
    if bsz % 16 == 0 or n_views == 1:
        return bsz, False
    # Tiny/odd shapes: dense fallback (single block, materialize the small [N, N] mask).
    return bsz * n_views, True


def supcon_loss(features, labels=None, mask=None, temperature=0.07,
                contrast_mode="all", base_temperature=0.07):
    """features: [bsz, n_views, ...]; labels: [bsz]; mask: [bsz, bsz]. Scalar loss."""
    if features.ndim < 3:
        raise ValueError("`features` needs to be [bsz, n_views, ...]")
    if features.ndim > 3:
        features = features.reshape(features.shape[0], features.shape[1], -1)
    bsz, n_views, dim = features.shape
    contrast_count = n_views

    if contrast_mode == "all":
        anchor_count = n_views
    elif contrast_mode == "one":
        # TODO(synk): contrast_mode='one' (anchor rows = view 0 only) not implemented.
        raise NotImplementedError("contrast_mode='one' not implemented")
    else:
        raise ValueError(f"Unknown mode: {contrast_mode}")

    n = bsz * anchor_count  # == bsz * contrast_count for 'all'

    # Positives mask at [bsz, bsz] granularity.  If only labels are given, build the
    # standard label-equality mask (same as the driving code's mask).
    lab = None
    if labels is not None:
        lab = jnp.asarray(labels).reshape(-1).astype(jnp.int32)
    if mask is None:
        if lab is None:
            raise ValueError("either `labels` or `mask` must be provided")
        mask_small = lab[:, None] == lab[None, :]
    else:
        mask_small = mask
    mask_f32 = mask_small.astype(jnp.float32)

    # Per-anchor positive count, precomputed once (O(bsz^2) in XLA, not per tile):
    #   cnt[v*bsz + i] = contrast_count * mask[i, :].sum() - mask[i, i]
    cnt_row = contrast_count * jnp.sum(mask_f32, axis=1) - jnp.diagonal(mask_f32)
    cnt = jnp.tile(cnt_row, anchor_count).reshape(n, 1).astype(jnp.float32)

    # contrast_feature = cat(unbind(features, dim=1), dim=0) -> [N, D].
    feat = jnp.transpose(features, (1, 0, 2)).reshape(n, dim).astype(jnp.float32)
    # Fold 1/temperature into the anchor operand only (O(N*D) once, instead of an
    # O(N^2) full-tile multiply per grid step inside the kernel).
    anchor_feat = (feat * (1.0 / float(temperature))).astype(jnp.bfloat16)
    contrast_feat = feat.astype(jnp.bfloat16)

    tile, dense_mask = _pick_tile(bsz, n_views)
    grid = (n // tile, n // tile)
    scale = float(temperature) / float(base_temperature)

    feat_specs = [
        pl.BlockSpec((tile, dim), lambda i, j: (i, 0)),   # anchor rows (resident in j)
        pl.BlockSpec((tile, dim), lambda i, j: (j, 0)),   # contrast rows
    ]
    cnt_spec = pl.BlockSpec((tile, 1), lambda i, j: (i, 0))     # constant in j
    out_spec = pl.BlockSpec((tile, 1), lambda i, j: (i, 0))
    scratch = [pltpu.VMEM((tile, 1), jnp.float32)] * 3          # running m, l, sum(pos*s)
    cparams = pltpu.CompilerParams(
        dimension_semantics=("parallel", "arbitrary"),
        vmem_limit_bytes=32 * 1024 * 1024,
    )

    # Labels fast-path: no (tile, tile) mask stream at all.  Only taken when the mask
    # is exactly the label-equality mask (caller passed labels and no explicit mask),
    # so arbitrary/asymmetric masks keep the exact module semantics.
    use_labels = (mask is None) and (lab is not None) and (tile % 128 == 0) and not dense_mask

    if use_labels:
        lab_anchor = jnp.tile(lab, anchor_count).reshape(n, 1)        # int32 (N,1)
        lab_contrast = jnp.tile(lab, contrast_count).reshape(1, n)    # int32 (1,N)
        kernel = functools.partial(_supcon_kernel_labels, scale=scale)
        in_specs = feat_specs + [
            pl.BlockSpec((tile, 1), lambda i, j: (i, 0)),
            pl.BlockSpec((1, tile), lambda i, j: (0, j)),
            cnt_spec,
        ]
        args = (anchor_feat, contrast_feat, lab_anchor, lab_contrast, cnt)
    else:
        # Mask path: int8 mask (half the bf16 HBM traffic; mask assumed binary per the
        # module docstring), repeated implicitly via a modular index_map so the
        # [N, N] repeat is never materialized (tiny dense fallback for odd shapes).
        mask_dtype = jnp.int8 if tile % 32 == 0 else jnp.float32
        if dense_mask:
            mask_in = jnp.tile(mask_f32, (anchor_count, contrast_count)).astype(mask_dtype)
        else:
            mask_in = mask_f32.astype(mask_dtype)
        rb = mask_in.shape[0] // tile
        cb = mask_in.shape[1] // tile
        kernel = functools.partial(_supcon_kernel_mask, scale=scale)
        in_specs = feat_specs + [
            pl.BlockSpec((tile, tile), lambda i, j: (i % rb, j % cb)),
            cnt_spec,
        ]
        args = (anchor_feat, contrast_feat, mask_in, cnt)

    per_anchor_loss = pl.pallas_call(
        kernel,
        out_shape=jax.ShapeDtypeStruct((n, 1), jnp.float32),
        grid_spec=pltpu.PrefetchScalarGridSpec(
            num_scalar_prefetch=0,
            grid=grid,
            in_specs=in_specs,
            out_specs=out_spec,
            scratch_shapes=scratch,
        ),
        compiler_params=cparams,
    )(*args)

    # loss.view(anchor_count, batch_size).mean() == mean over all N anchors.
    return jnp.mean(per_anchor_loss)


def _reference(features, mask, temperature=0.05, base_temperature=0.07, quantize=False):
    """Pure-JAX mirror of the PyTorch forward (contrast_mode='all')."""
    bsz, n_views, dim = features.shape
    cf = jnp.transpose(features, (1, 0, 2)).reshape(n_views * bsz, dim).astype(jnp.float32)
    n = cf.shape[0]
    if quantize:
        # Mirror the kernel's quantization points: scaled anchor / raw contrast in bf16.
        a = (cf * (1.0 / float(temperature))).astype(jnp.bfloat16).astype(jnp.float32)
        c = cf.astype(jnp.bfloat16).astype(jnp.float32)
        adc = jnp.dot(a, c.T, precision=lax.Precision.HIGHEST)
    else:
        adc = jnp.dot(cf, cf.T, precision=lax.Precision.HIGHEST) / temperature
    logits = adc - jnp.max(adc, axis=1, keepdims=True)
    m = jnp.tile(mask.astype(jnp.float32), (n_views, n_views))
    lm = 1.0 - jnp.eye(n, dtype=jnp.float32)
    m = m * lm
    exp_logits = jnp.exp(logits) * lm
    log_prob = logits - jnp.log(exp_logits.sum(1, keepdims=True))
    mlpp = (m * log_prob).sum(1) / m.sum(1)
    return (-(temperature / base_temperature) * mlpp).mean()


if __name__ == "__main__":
    key = jax.random.PRNGKey(0)

    # (bsz, n_views, dim):
    #   (16, 2, 32)  -> small-batch tiled path (tile = bsz, grid 2x2)
    #   (8, 2, 32)   -> dense fallback path (single block)
    #   (384, 2, 32) -> production-style path (tile = 128, grid 6x6, int8 mask / labels path)
    #   (128, 1, 64) -> n_views = 1 (the Pretrain.py `features.unsqueeze(1)` usage)
    configs = [(16, 2, 32), (8, 2, 32), (384, 2, 32), (128, 1, 64)]
    for idx, (bsz, n_views, dim) in enumerate(configs):
        kf, kl, key = jax.random.split(key, 3)
        feats = jax.random.normal(kf, (bsz, n_views, dim), dtype=jnp.float32)
        feats = feats / jnp.linalg.norm(feats, axis=-1, keepdims=True)
        labels = jax.random.randint(kl, (bsz,), 0, 4)
        mask = (labels[:, None] == labels[None, :]).astype(jnp.float32)

        # Mask path (module semantics: mask provided -> mask used).
        loss = supcon_loss(feats, labels=labels, mask=mask, temperature=0.05)
        loss = jax.block_until_ready(loss)

        ref_q = _reference(feats, mask, temperature=0.05, quantize=True)
        ref_f32 = _reference(feats, mask, temperature=0.05, quantize=False)

        assert jnp.isfinite(loss), (idx, loss)
        assert jnp.allclose(loss, ref_q, rtol=2e-3, atol=2e-3), (idx, loss, ref_q)
        assert jnp.allclose(loss, ref_f32, rtol=5e-2, atol=5e-2), (idx, loss, ref_f32)

        # Labels fast-path (no mask HBM stream) must agree with the same reference.
        loss_lab = supcon_loss(feats, labels=labels, temperature=0.05)
        loss_lab = jax.block_until_ready(loss_lab)
        assert jnp.isfinite(loss_lab), (idx, loss_lab)
        assert jnp.allclose(loss_lab, ref_q, rtol=2e-3, atol=2e-3), (idx, loss_lab, ref_q)

    print("KERNEL_OK")
</pallas_src>

<mosaic_0001>
module attributes {stable_mosaic.version = 11 : i64} {
  func.func @_supcon_kernel_mask(%arg0: i32, %arg1: i32, %arg2: memref<16x32xbf16, #tpu.memory_space<vmem>>, %arg3: memref<16x32xbf16, #tpu.memory_space<vmem>>, %arg4: memref<16x16xf32, #tpu.memory_space<vmem>>, %arg5: memref<16x1xf32, #tpu.memory_space<vmem>>, %arg6: memref<16x1xf32, #tpu.memory_space<vmem>>, %arg7: memref<16x1xf32, #tpu.memory_space<vmem>>, %arg8: memref<16x1xf32, #tpu.memory_space<vmem>>, %arg9: memref<16x1xf32, #tpu.memory_space<vmem>>) attributes {dimension_semantics = [#tpu.dimension_semantics<parallel>, #tpu.dimension_semantics<arbitrary>], iteration_bounds = array<i64: 2, 2>, scalar_prefetch = 0 : i64, scratch_operands = 3 : i64, tpu.core_type = #tpu.core_type<tc>, window_params = [{transform_indices = @transform_0, window_bounds = array<i64: 16, 32>}, {transform_indices = @transform_1, window_bounds = array<i64: 16, 32>}, {transform_indices = @transform_2, window_bounds = array<i64: 16, 16>}, {transform_indices = @transform_3, window_bounds = array<i64: 16, 1>}, {transform_indices = @transform_4, window_bounds = array<i64: 16, 1>}]} {
    %c0 = arith.constant 0 : index
    %c0_0 = arith.constant 0 : index
    %0 = vector.load %arg2[%c0, %c0_0] : memref<16x32xbf16, #tpu.memory_space<vmem>>, vector<16x32xbf16>
    %c0_1 = arith.constant 0 : index
    %c0_2 = arith.constant 0 : index
    %1 = vector.load %arg3[%c0_1, %c0_2] : memref<16x32xbf16, #tpu.memory_space<vmem>>, vector<16x32xbf16>
    %cst = arith.constant dense<0.000000e+00> : vector<16x16xf32>
    %2 = tpu.matmul %0, %1, %cst {dimension_numbers = #tpu.dot_dimension_numbers<[1], [1], [0], [0], [0, 0, 1, 0], [], []>} : vector<16x32xbf16>, vector<16x32xbf16>, vector<16x16xf32> -> vector<16x16xf32>
    %c0_3 = arith.constant 0 : index
    %c0_4 = arith.constant 0 : index
    %3 = vector.load %arg4[%c0_3, %c0_4] : memref<16x16xf32, #tpu.memory_space<vmem>>, vector<16x16xf32>
    %c0_i32 = arith.constant 0 : i32
    %4 = arith.cmpi eq, %arg1, %c0_i32 : i32
    %5 = arith.extui %4 : i1 to i32
    %c0_i32_5 = arith.constant 0 : i32
    %6 = arith.cmpi ne, %5, %c0_i32_5 : i32
    scf.if %6 {
      %cst_24 = arith.constant -1.000000e+30 : f32
      %42 = vector.broadcast %cst_24 : f32 to vector<16x1xf32>
      %c0_25 = arith.constant 0 : index
      %c0_26 = arith.constant 0 : index
      %43 = vector.load %arg7[%c0_25, %c0_26] : memref<16x1xf32, #tpu.memory_space<vmem>>, vector<16x1xf32>
      tpu.vector_store %arg7[%c0_25, %c0_26], %42 {strides = array<i32>} : memref<16x1xf32, #tpu.memory_space<vmem>>, vector<16x1xf32>,
      %cst_27 = arith.constant 0.000000e+00 : f32
      %44 = vector.broadcast %cst_27 : f32 to vector<16x1xf32>
      %c0_28 = arith.constant 0 : index
      %c0_29 = arith.constant 0 : index
      %45 = vector.load %arg8[%c0_28, %c0_29] : memref<16x1xf32, #tpu.memory_space<vmem>>, vector<16x1xf32>
      tpu.vector_store %arg8[%c0_28, %c0_29], %44 {strides = array<i32>} : memref<16x1xf32, #tpu.memory_space<vmem>>, vector<16x1xf32>,
      %cst_30 = arith.constant 0.000000e+00 : f32
      %46 = vector.broadcast %cst_30 : f32 to vector<16x1xf32>
      %c0_31 = arith.constant 0 : index
      %c0_32 = arith.constant 0 : index
      %47 = vector.load %arg9[%c0_31, %c0_32] : memref<16x1xf32, #tpu.memory_space<vmem>>, vector<16x1xf32>
      tpu.vector_store %arg9[%c0_31, %c0_32], %46 {strides = array<i32>} : memref<16x1xf32, #tpu.memory_space<vmem>>, vector<16x1xf32>,
    } else {
    }
    %7 = tpu.iota {dimensions = array<i32: 0>} : vector<16x16xi32>
    %8 = tpu.iota {dimensions = array<i32: 1>} : vector<16x16xi32>
    %9 = arith.cmpi eq, %arg0, %arg1 : i32
    %10 = arith.cmpi eq, %7, %8 : vector<16x16xi32>
    %11 = vector.broadcast %9 : i1 to vector<16x16xi1>
    %12 = arith.andi %11, %10 : vector<16x16xi1>
    %c0_6 = arith.constant 0 : index
    %c0_7 = arith.constant 0 : index
    %13 = vector.load %arg7[%c0_6, %c0_7] : memref<16x1xf32, #tpu.memory_space<vmem>>, vector<16x1xf32>
    %cst_8 = arith.constant dense<0xFF800000> : vector<16xf32>
    %14 = vector.multi_reduction <maximumf>, %2, %cst_8 [1] : vector<16x16xf32> to vector<16xf32>
    %15 = vector.shape_cast %14 : vector<16xf32> to vector<16x1xf32>
    %16 = arith.maximumf %13, %15 : vector<16x1xf32>
    %17 = vector.broadcast %16 : vector<16x1xf32> to vector<16x16xf32>
    %18 = arith.subf %2, %17 : vector<16x16xf32>
    %19 = math.exp %18 : vector<16x16xf32>
    %cst_9 = arith.constant 0.000000e+00 : f32
    %20 = vector.broadcast %cst_9 : f32 to vector<16x16xf32>
    %21 = arith.select %12, %20, %19 : vector<16x16xi1>, vector<16x16xf32>
    %cst_10 = arith.constant 0.000000e+00 : f32
    %22 = vector.broadcast %cst_10 : f32 to vector<16x16xf32>
    %23 = arith.select %12, %22, %3 : vector<16x16xi1>, vector<16x16xf32>
    %c0_11 = arith.constant 0 : index
    %c0_12 = arith.constant 0 : index
    %24 = vector.load %arg8[%c0_11, %c0_12] : memref<16x1xf32, #tpu.memory_space<vmem>>, vector<16x1xf32>
    %25 = arith.subf %13, %16 : vector<16x1xf32>
    %26 = math.exp %25 : vector<16x1xf32>
    %27 = arith.mulf %24, %26 : vector<16x1xf32>
    %cst_13 = arith.constant dense<0.000000e+00> : vector<16xf32>
    %28 = vector.multi_reduction <add>, %21, %cst_13 [1] : vector<16x16xf32> to vector<16xf32>
    %29 = vector.shape_cast %28 : vector<16xf32> to vector<16x1xf32>
    %30 = arith.addf %27, %29 : vector<16x1xf32>
    %c0_14 = arith.constant 0 : index
    %c0_15 = arith.constant 0 : index
    %31 = vector.load %arg8[%c0_14, %c0_15] : memref<16x1xf32, #tpu.memory_space<vmem>>, vector<16x1xf32>
    tpu.vector_store %arg8[%c0_14, %c0_15], %30 {strides = array<i32>} : memref<16x1xf32, #tpu.memory_space<vmem>>, vector<16x1xf32>,
    %c0_16 = arith.constant 0 : index
    %c0_17 = arith.constant 0 : index
    %32 = vector.load %arg9[%c0_16, %c0_17] : memref<16x1xf32, #tpu.memory_space<vmem>>, vector<16x1xf32>
    %33 = arith.mulf %23, %2 : vector<16x16xf32>
    %cst_18 = arith.constant dense<0.000000e+00> : vector<16xf32>
    %34 = vector.multi_reduction <add>, %33, %cst_18 [1] : vector<16x16xf32> to vector<16xf32>
    %35 = vector.shape_cast %34 : vector<16xf32> to vector<16x1xf32>
    %36 = arith.addf %32, %35 : vector<16x1xf32>
    %c0_19 = arith.constant 0 : index
    %c0_20 = arith.constant 0 : index
    %37 = vector.load %arg9[%c0_19, %c0_20] : memref<16x1xf32, #tpu.memory_space<vmem>>, vector<16x1xf32>
    tpu.vector_store %arg9[%c0_19, %c0_20], %36 {strides = array<i32>} : memref<16x1xf32, #tpu.memory_space<vmem>>, vector<16x1xf32>,
    %c0_21 = arith.constant 0 : index
    %c0_22 = arith.constant 0 : index
    %38 = vector.load %arg7[%c0_21, %c0_22] : memref<16x1xf32, #tpu.memory_space<vmem>>, vector<16x1xf32>
    tpu.vector_store %arg7[%c0_21, %c0_22], %16 {strides = array<i32>} : memref<16x1xf32, #tpu.memory_space<vmem>>, vector<16x1xf32>,
    %c1_i32 = arith.constant 1 : i32
    %39 = arith.cmpi eq, %arg1, %c1_i32 : i32
    %40 = arith.extui %39 : i1 to i32
    %c0_i32_23 = arith.constant 0 : i32
    %41 = arith.cmpi ne, %40, %c0_i32_23 : i32
    scf.if %41 {
      %c0_24 = arith.constant 0 : index
      %c0_25 = arith.constant 0 : index
      %42 = vector.load %arg9[%c0_24, %c0_25] : memref<16x1xf32, #tpu.memory_space<vmem>>, vector<16x1xf32>
      %c0_26 = arith.constant 0 : index
      %c0_27 = arith.constant 0 : index
      %43 = vector.load %arg5[%c0_26, %c0_27] : memref<16x1xf32, #tpu.memory_space<vmem>>, vector<16x1xf32>
      %44 = arith.divf %42, %43 : vector<16x1xf32>
      %c0_28 = arith.constant 0 : index
      %c0_29 = arith.constant 0 : index
      %45 = vector.load %arg7[%c0_28, %c0_29] : memref<16x1xf32, #tpu.memory_space<vmem>>, vector<16x1xf32>
      %46 = arith.subf %44, %45 : vector<16x1xf32>
      %c0_30 = arith.constant 0 : index
      %c0_31 = arith.constant 0 : index
      %47 = vector.load %arg8[%c0_30, %c0_31] : memref<16x1xf32, #tpu.memory_space<vmem>>, vector<16x1xf32>
      %48 = math.log %47 : vector<16x1xf32>
      %49 = arith.subf %46, %48 : vector<16x1xf32>
      %cst_32 = arith.constant -0.714285731 : f32
      %50 = vector.broadcast %cst_32 : f32 to vector<16x1xf32>
      %51 = arith.mulf %50, %49 : vector<16x1xf32>
      %c0_33 = arith.constant 0 : index
      %c0_34 = arith.constant 0 : index
      %52 = vector.load %arg6[%c0_33, %c0_34] : memref<16x1xf32, #tpu.memory_space<vmem>>, vector<16x1xf32>
      tpu.vector_store %arg6[%c0_33, %c0_34], %51 {strides = array<i32>} : memref<16x1xf32, #tpu.memory_space<vmem>>, vector<16x1xf32>,
    } else {
    }
    return
  }
  func.func @transform_0(%arg0: i32, %arg1: i32) -> (i32, i32) {
    %c0_i32 = arith.constant 0 : i32
    %c0_i32_0 = arith.constant 0 : i32
    return %arg0, %c0_i32 : i32, i32
  }
  func.func @transform_1(%arg0: i32, %arg1: i32) -> (i32, i32) {
    %c0_i32 = arith.constant 0 : i32
    %c0_i32_0 = arith.constant 0 : i32
    return %arg1, %c0_i32 : i32, i32
  }
  func.func @transform_2(%arg0: i32, %arg1: i32) -> (i32, i32) {
    %c1_i32 = arith.constant 1 : i32
    %c0_i32 = arith.constant 0 : i32
    %0 = arith.cmpi eq, %c1_i32, %c0_i32 : i32
    %c1_i32_0 = arith.constant 1 : i32
    %1 = arith.select %0, %c1_i32_0, %c1_i32 : i32
    %2 = arith.remsi %arg0, %1 : i32
    %c0_i32_1 = arith.constant 0 : i32
    %3 = arith.cmpi ne, %2, %c0_i32_1 : i32
    %c0_i32_2 = arith.constant 0 : i32
    %4 = arith.cmpi slt, %2, %c0_i32_2 : i32
    %c0_i32_3 = arith.constant 0 : i32
    %5 = arith.cmpi slt, %1, %c0_i32_3 : i32
    %6 = arith.xori %4, %5 : i1
    %7 = arith.andi %6, %3 : i1
    %8 = arith.addi %2, %1 : i32
    %9 = arith.select %7, %8, %2 : i32
    %c1_i32_4 = arith.constant 1 : i32
    %c0_i32_5 = arith.constant 0 : i32
    %10 = arith.cmpi eq, %c1_i32_4, %c0_i32_5 : i32
    %c1_i32_6 = arith.constant 1 : i32
    %11 = arith.select %10, %c1_i32_6, %c1_i32_4 : i32
    %12 = arith.remsi %arg1, %11 : i32
    %c0_i32_7 = arith.constant 0 : i32
    %13 = arith.cmpi ne, %12, %c0_i32_7 : i32
    %c0_i32_8 = arith.constant 0 : i32
    %14 = arith.cmpi slt, %12, %c0_i32_8 : i32
    %c0_i32_9 = arith.constant 0 : i32
    %15 = arith.cmpi slt, %11, %c0_i32_9 : i32
    %16 = arith.xori %14, %15 : i1
    %17 = arith.andi %16, %13 : i1
    %18 = arith.addi %12, %11 : i32
    %19 = arith.select %17, %18, %12 : i32
    %c0_i32_10 = arith.constant 0 : i32
    return %9, %19 : i32, i32
  }
  func.func @transform_3(%arg0: i32, %arg1: i32) -> (i32, i32) {
    %c0_i32 = arith.constant 0 : i32
    %c0_i32_0 = arith.constant 0 : i32
    return %arg0, %c0_i32 : i32, i32
  }
  func.func @transform_4(%arg0: i32, %arg1: i32) -> (i32, i32) {
    %c0_i32 = arith.constant 0 : i32
    %c0_i32_0 = arith.constant 0 : i32
    return %arg0, %c0_i32 : i32, i32
  }
}

</mosaic_0001>

<bundles_post_ra>
// kernel: tpu_custom_call.1
= control target key start
LH: loop header
LB: loop body
LE: loop exit
PB: predicated region body
PF: predicated region fallthrough
CT: control target
= control target key end

     0   :  { %9 = vsyncpa [#allocation6], 0  ;;  %s774_s15 = smov 0   ;;  %s776_s16 = smov 0   ;;  %s913_s0 = inlined_call_operand.vmem [shape: bf16[32,32], index: 0, kind: input, shape index: {}]   ;;  %s914_s1 = inlined_call_operand.vmem [shape: bf16[32,32], index: 1, kind: input, shape index: {}]   ;;  %s915_s2 = inlined_call_operand.hbm [shape: f32[16,16], index: 2, kind: input, shape index: {}]   ;;  %s916_s3 = inlined_call_operand.vmem [shape: f32[32,1], index: 3, kind: input, shape index: {}]   ;;  %s917_s4 = inlined_call_operand.vmem [shape: f32[32,1], index: 4, kind: output, shape index: {}]  }
   0x1   :  { %s778_s17 = smov 0   ;;  %s780_s18 = smov 0  }
   0x2   :  { %s782_s19 = smov 0  }
   0x3 LB: > { %s561_s20 = sadd.s32 4294967295, %s739_s19   ;;  %s24_s21 = sadd.s32 1, %s731_s17  ;;  %s739_s19 = sphi %s782_s19, %s15_s19   ;;  %s735_s18 = sphi %s780_s18, %s929_s18   ;;  %s731_s17 = sphi %s778_s17, %s928_s17   ;;  %s727_s16 = sphi %s776_s16, %s927_s16   ;;  %s723_s15 = sphi %s774_s15, %s926_s15  }
   0x4   : > { %p25_p0 = scmp.ge.s32.totalorder %s24_s21, 2  ;;  %s27_s22 = sadd.s32 1, %s735_s18 }
   0x5   : > { %p563_p1 = scmp.ge.s32.totalorder %s739_s19, 1  ;;  %p157_p2 = scmp.lt.s32.totalorder %s739_s19, 5 }
   0x6   : > { %s931_s21 = smov (%p25_p0, %s24_s21), 0  ;;  %s933_s22 = smov (!%p25_p0, %s27_s22), %s735_s18 }
   0x7   : > { %p807_p3 = pnand %p563_p1, %p157_p2  ;;  %p29_p4 = scmp.ge.s32.totalorder %s933_s22, 2 }
   0x8   : > { %p811_p5 = scmp.eq.s32.totalorder %s561_s20, 0  ;;  %s741_s25 = smov [#allocation5]  }
   0x9   : > { %s921_s23 = scalar_select %p807_p3, 1, 0 }
   0xa   : > { %s922_s24 = scalar_select %p811_p5, 1, 0 }
   0xb   : > { %p595_p6 = pneg %p807_p3  ;;  %s935_s22 = smov (%p29_p4, %s933_s22), 0 }
   0xc   : > { %s169_s26 = sshll.u32 %s741_s25, 4  ;;  %s669_s30 = scalar_lea.hbm %s915_s2, 256  ;;  %s170_s26 = int_to_ptr.vmem [resolvable:$true] %s169_s26 }
   0xd   : > { %p821_p7 = pnand %p811_p5, %p595_p6  ;;  %p670_p8 = scmp.ne.s32.totalorder %s915_s2, %s669_s30 }
   0xe   : > { %p676_p12 = scmp.lt.u32.totalorder %s669_s30, %s915_s2 }
   0xf   : > { %p671_p9 = pneg %p821_p7 }
  0x11   : > { %p672_p10 = pnand %p671_p9, %p670_p8 }
  0x13   : > { %p673_p11 = pneg %p672_p10 }
  0x15   : > { %p678_p13 = pnand %p676_p12, %p673_p11 }
  0x17   : > { %681 = shalt.err (!%p678_p13)
}
  0x18   : > { %s682_s9 = scalar_lea.vmem %s170_s26, 256  ;;  %p690_p4 = scmp.lt.s32.totalorder %s170_s26, %s170_s26 }
  0x19   : > { %p683_p0 = scmp.ne.s32.totalorder %s170_s26, %s682_s9  ;;  %p691_p6 = scmp.lt.s32.totalorder %s682_s9, %s682_s9 }
  0x1b   : > { %p685_p1 = pnand %p683_p0, %p671_p9  ;;  %p692_p5 = por %p691_p6, %p690_p4 }
  0x1d   : > { %p686_p2 = pneg %p685_p1 }
  0x1f   : > { %p693_p3 = pnand %p692_p5, %p686_p2 }
  0x21   : > { %696 = shalt.err (!%p693_p3)
}
  0x22   : > { %s742_s10 = smov 128   ;;  %s743_s11 = smov 8  }
  0x23   : > { %598 = dma.hbm_to_vmem [thread:$0]  (!%p821_p7), %s915_s2, 256, %s170_s26, [#allocation6], %s742_s10, %s742_s10, %s743_s11  }
  0x24   : > { %p924_p8 = scmp.ne.s32.totalorder %s921_s23, 0 }
  0x25   : > { %p925_p10 = scmp.ne.s32.totalorder (!%p924_p8), %s922_s24, 0 }
  0x26   : > { %212 = sbr.rel (%p924_p8) target bundleno = 741 (0x2e5), region = 36 }
  0x2d   : > { %718 = dma.done.wait (%p925_p10), [#allocation6], 256  }
  0x2e   : > { %720 = vsyncadd (%p925_p10), [#allocation6], 4294967040  ;;  %s570_s14 = sshll.u32 %s723_s15, 1  ;;  %v744_v0 = vmov 0.0   ;;  %vm745_vm0 = vmmov 0   ;;  %s568_s20 = sshll.u32 %s727_s16, 1 }
  0x2f   : > { %585 = vmatprep.subr.bf16.mxu0 %v744_v0  ;;  %p255_p3 = scmp.lt.s32.totalorder %s570_s14, 3  ;;  %587 = vmatprep.mubr.msk.bf16.mxu0 %vm745_vm0, %v744_v0  ;;  %p249_p5 = scmp.lt.s32.totalorder %s568_s20, 3  ;;  %v852_v1 = vld [vmem:[#allocation5] sm:$0xff]  ;;  %v854_v2 = vld [vmem:[#allocation5 + $0x8] sm:$0xff]  ;;  %vm287_vm1 = vcmask 261120  }
  0x30   : > { %p579_p7 = scmp.ne.s32.totalorder %s723_s15, 0 }
  0x31   : > { %s937_s14 = smov (!%p255_p3, %s570_s14), 3  ;;  %s939_s20 = smov (!%p249_p5, %s568_s20), 3 }
  0x32   : > { %s571_s23 = sshll.u32 %s937_s14, 2  ;;  %s569_s28 = sshll.u32 %s939_s20, 2  ;;  %vm341_vm2 = vcmask (!%p579_p7), 7168   ;;  %v746_v10 = vmov (!%p579_p7), -1e+30   ;;  %v747_v11 = vmov (!%p579_p7), 0.0  }
  0x33   : > { %s258_s27 = scalar_lea.vmem %s914_s1, %s571_s23  ;;  %s252_s30 = scalar_lea.vmem %s913_s0, %s569_s28  ;;  %342 = vst.msk [vmem:[#allocation2] sm:$0xff] (!%p579_p7), %vm341_vm2, %v746_v10  ;;  %343 = vst.msk [vmem:[#allocation2 + $0x8] sm:$0xff] (!%p579_p7), %vm341_vm2, %v746_v10 }
  0x34   : > { %s573_s5 = sshll.u32 %s939_s20, 3  ;;  %v649_v3 = vld [vmem:[%s258_s27] sm:$0xff]   ;;  %344 = vst.msk [vmem:[#allocation3] sm:$0xff] (!%p579_p7), %vm341_vm2, %v747_v11  ;;  %345 = vst.msk [vmem:[#allocation3 + $0x8] sm:$0xff] (!%p579_p7), %vm341_vm2, %v747_v11 }
  0x35   : > { %s862_s8 = scalar_lea.vmem %s916_s3, %s573_s5  ;;  %s867_s11 = scalar_lea.vmem %s917_s4, %s573_s5  ;;  %v292_v4 = vsel %vm287_vm1, %v649_v3, 0  ;;  %v650_v5 = vld [vmem:[%s252_s30] sm:$0xff]   ;;  %346 = vst.msk [vmem:[#allocation4] sm:$0xff] (!%p579_p7), %vm341_vm2, %v747_v11  ;;  %347 = vst.msk [vmem:[#allocation4 + $0x8] sm:$0xff] (!%p579_p7), %vm341_vm2, %v747_v11 }
  0x36   : > { %586 = vmatpush3.bf16.xpose.msra.mxu0 %v292_v4 }
  0x3d   : > { %588 = vmatmul.mubr.msk.bf16.vlgmr.msra.gmra.mrb[0].mxu0 %vm287_vm1, %v650_v5 }
 0x10d   : > { %340 = sbr.rel (%p579_p7) target bundleno = 276 (0x114), region = 44 }
 0x110   : > { %v328_v6 = vpop.f32.mrb[0].mxu0 }
 0x111   : > { %v589_v7 = vpop.f32.mrb[1].mxu0 }
 0x112   : > { %v869_v8 = vpop.f32.mrb[2].mxu0 }
 0x113   : > { %v590_v9 = vpop.f32.mrb[3].mxu0 }
 0x114 PF: > { %vm363_vm3 = vcmask 130048   ;;  %v748_v14 = vmov 0   ;;  %v361_v15 = vld [vmem:[#allocation2] sm:$0xff]  ;;  %vm410_vm4 = vcmask 7168   ;;  %v362_v18 = vld [vmem:[#allocation2 + $0x8] sm:$0xff]  ;;  %p353_p9 = scmp.eq.s32.totalorder %s727_s16, %s723_s15  ;;  %v348_v24 = vlaneseq  ;;  %v392_v49 = vld [vmem:[#allocation3] sm:$0xff] }
 0x115   : > { %v364_v12 = vsel %vm363_vm3, %v328_v6, -inf  ;;  %v367_v13 = vsel %vm363_vm3, %v869_v8, -inf  ;;  %651 = vset.pattern.permute.xlu1 %v748_v14  ;;  %652 = vset.pattern.permute.xlu0 %v748_v14  ;;  %v393_v53 = vld [vmem:[#allocation3 + $0x8] sm:$0xff]  ;;  %v413_v55 = vld [vmem:[#allocation4] sm:$0xff]  ;;  %v414_v61 = vld [vmem:[#allocation4 + $0x8] sm:$0xff]  ;;  %p580_p11 = scmp.ne.s32.totalorder %s723_s15, 1 }
 0x116   : > { %365 = vmax.xlane.f32.xlu0 %v364_v12  ;;  %s356_s12 = scalar_select %p353_p9, 1, 0  ;;  %v349_v28 = vshrl.u32 %v348_v24, 7  ;;  %v352_v29 = vand.u32 127, %v348_v24 }
 0x117   : > { %v435_v0 = vld [vmem:[%s862_s8] sm:$0xff] (!%p580_p11) }
 0x118   : > { %v357_v31 = vstv %s356_s12  ;;  %vm354_vm5 = vcmp.eq.s32.totalorder %v349_v28, %v352_v29  ;;  %v350_v33 = vadd.s32 8, %v349_v28 }
 0x119   : > { %vm358_vm6 = vcmp.eq.s32.totalorder %v357_v31, 1 }
 0x11a   : > { %368 = vmax.xlane.f32.xlu0 %v367_v13  ;;  %vm359_vm7 = vmand %vm358_vm6, %vm354_vm5  ;;  %vm355_vm8 = vcmp.eq.s32.totalorder %v350_v33, %v352_v29 }
 0x11b   : > { %v390_v34 = vsel %vm359_vm7, 0.0, %v852_v1  ;;  %vm360_vm9 = vmand %vm358_vm6, %vm355_vm8 }
 0x11c   : > { %v415_v36 = vmul.f32 %v390_v34, %v328_v6  ;;  %v391_v38 = vsel %vm360_vm9, 0.0, %v854_v2  ;;  %v436_v2 = vld [vmem:[%s862_s8 + $0x8] sm:$0xff] (!%p580_p11) }
 0x11d   : > { %v416_v42 = vmul.f32 %v391_v38, %v869_v8 }
 0x11e   : > { %v417_v41 = vsel %vm363_vm3, %v415_v36, 0.0 }
 0x11f   : > { %v420_v45 = vsel %vm363_vm3, %v416_v42, 0.0 }
 0x1a3   : > { %v366_v16 = vpop.xlane.xlu0 %365 }
 0x1a4   : > { %v370_v17 = vmax.f32 %v361_v15, %v366_v16 }
 0x1a6   : > { %v394_v19 = vsub.f32 %v361_v15, %v370_v17  ;;  %427 = vst.msk [vmem:[#allocation2] sm:$0xff] %vm410_vm4, %v370_v17  ;;  %374 = vperm.xlu1 %651, %v370_v17  }
 0x1a7   : > { %v369_v20 = vpop.xlane.xlu0 %368 }
 0x1a8   : > { %v371_v21 = vmax.f32 %v362_v18, %v369_v20  ;;  %v396_v46 = vmul.f32 1.442695, %v394_v19 }
 0x1aa   : > { %v395_v22 = vsub.f32 %v362_v18, %v371_v21  ;;  %428 = vst.msk [vmem:[#allocation2 + $0x8] sm:$0xff] %vm410_vm4, %v371_v21  ;;  %379 = vperm.xlu1 %651, %v371_v21  }
 0x1ac   : > { %v398_v47 = vmul.f32 1.442695, %v395_v22 }
 0x1b1   : > { %v442_v12 = vld [vmem:[#allocation2 + $0x8] sm:$0xff] (!%p580_p11) }
 0x225   : > { %v375_v23 = vpop.permute.xlu1 %374 }
 0x226   : > { %v382_v25 = vsub.f32 %v328_v6, %v375_v23  ;;  %v441_v6 = vld [vmem:[#allocation2] sm:$0xff] (!%p580_p11) }
 0x228   : > { %v384_v26 = vmul.f32 1.442695, %v382_v25 }
 0x229   : > { %v380_v27 = vpop.permute.xlu1 %379 }
 0x22a   : > { %653 = vpow2.f32 %v384_v26  ;;  %v383_v30 = vsub.f32 %v869_v8, %v380_v27 }
 0x22c   : > { %v386_v32 = vmul.f32 1.442695, %v383_v30 }
 0x22e   : > { %655 = vpow2.f32 %v386_v32 }
 0x22f   : > { %657 = vpow2.f32 %v396_v46 }
 0x230   : > { %659 = vpow2.f32 %v398_v47 }
 0x231   : > { %661 = vrcp.f32 (!%p580_p11), %v435_v0 }
 0x234   : > { %v654_v35 = vpop.eup %653 }
 0x235   : > { %v388_v37 = vsel %vm359_vm7, 0.0, %v654_v35 }
 0x236   : > { %v402_v39 = vsel %vm363_vm3, %v388_v37, 0.0 }
 0x237   : > { %403 = vadd.xlane.f32.xlu0 %v402_v39 }
 0x238   : > { %v656_v40 = vpop.eup %655 }
 0x239   : > { %v389_v43 = vsel %vm360_vm9, 0.0, %v656_v40  ;;  %v658_v48 = vpop.eup %657 }
 0x23a   : > { %v405_v44 = vsel %vm363_vm3, %v389_v43, 0.0  ;;  %v400_v50 = vmul.f32 %v658_v48, %v392_v49  ;;  %v660_v51 = vpop.eup %659 }
 0x23b   : > { %418 = vadd.xlane.f32.xlu0 %v417_v41  ;;  %406 = vadd.xlane.f32.xlu1 %v405_v44  ;;  %v401_v56 = vmul.f32 %v660_v51, %v393_v53  ;;  %v662_v5 = vpop.eup (!%p580_p11), %661 }
 0x23f   : > { %421 = vadd.xlane.f32.xlu0 %v420_v45 }
 0x2c4   : > { %v404_v52 = vpop.xlane.xlu0 %403 }
 0x2c5   : > { %v408_v54 = vadd.f32 %v404_v52, %v400_v50 }
 0x2c7   : > { %411 = vst.msk [vmem:[#allocation3] sm:$0xff] %vm410_vm4, %v408_v54 }
 0x2c8   : > { %v419_v57 = vpop.xlane.xlu0 %418  ;;  %v407_v58 = vpop.xlane.xlu1 %406 }
 0x2c9   : > { %v423_v59 = vadd.f32 %v419_v57, %v413_v55  ;;  %v409_v60 = vadd.f32 %v407_v58, %v401_v56  ;;  %432 = sbr.rel (%p580_p11) target bundleno = 741 (0x2e5), region = 48 }
 0x2cb   : > { %425 = vst.msk [vmem:[#allocation4] sm:$0xff] %vm410_vm4, %v423_v59  ;;  %412 = vst.msk [vmem:[#allocation3 + $0x8] sm:$0xff] %vm410_vm4, %v409_v60 }
 0x2cc   : > { %v422_v62 = vpop.xlane.xlu0 %421 }
 0x2cd   : > { %v424_v63 = vadd.f32 %v422_v62, %v414_v61 }
 0x2ce   : > { %v445_v1 = vld [vmem:[#allocation3] sm:$0xff] (!%p580_p11) }
 0x2cf   : > { %426 = vst.msk [vmem:[#allocation4 + $0x8] sm:$0xff] %vm410_vm4, %v424_v63  ;;  %663 = vlog2.f32 (!%p580_p11), %v445_v1 }
 0x2d0   : > { %665 = vrcp.f32 %v436_v2 }
 0x2d2   : > { %v446_v3 = vld [vmem:[#allocation3 + $0x8] sm:$0xff]  ;;  %v433_v4 = vld [vmem:[#allocation4] sm:$0xff] }
 0x2d3   : > { %667 = vlog2.f32 %v446_v3  ;;  %v438_v9 = vmul.f32 %v662_v5, %v433_v4 }
 0x2d5   : > { %v443_v14 = vsub.f32 %v438_v9, %v441_v6 }
 0x2d6   : > { %v434_v7 = vld [vmem:[#allocation4 + $0x8] sm:$0xff] }
 0x2d9   : > { %v664_v8 = vpop.eup %663 }
 0x2da   : > { %v666_v10 = vpop.eup %665  ;;  %v448_v11 = vmul.f32 0.6931472, %v664_v8 }
 0x2db   : > { %v440_v15 = vmul.f32 %v666_v10, %v434_v7 }
 0x2dc   : > { %v451_v17 = vsub.f32 %v443_v14, %v448_v11 }
 0x2dd   : > { %v668_v13 = vpop.eup %667  ;;  %v444_v18 = vsub.f32 %v440_v15, %v442_v12 }
 0x2de   : > { %v450_v16 = vmul.f32 0.6931472, %v668_v13  ;;  %v453_v19 = vmul.f32 -0.71428573, %v451_v17 }
 0x2e0   : > { %v452_v20 = vsub.f32 %v444_v18, %v450_v16  ;;  %455 = vst.msk [vmem:[%s867_s11] sm:$0xff] %vm410_vm4, %v453_v19 }
 0x2e2   : > { %v454_v21 = vmul.f32 -0.71428573, %v452_v20 }
 0x2e4   : > { %456 = vst.msk [vmem:[%s867_s11 + $0x8] sm:$0xff] %vm410_vm4, %v454_v21 }
 0x2e5 PF: > { %s15_s19 = sadd.s32 1, %s739_s19   ;;  %s926_s15 = smov %s731_s17 }
 0x2e6   : > { %p12_p12 = scmp.ge.s32.totalorder %s15_s19, 6   ;;  %s927_s16 = smov %s735_s18 }
 0x2e7   : > { %s928_s17 = smov %s931_s21  ;;  %s929_s18 = smov %s935_s22 }
 0x2e8   :  { %14 = sbr.rel (!%p12_p12) target bundleno = 3 (0x3), region = 85 }
 0x2ef   :  { %479 = vsyncpa [#allocation6], 1 }
 0x2f0   :  { %481 = vsyncpa [#allocation6 + $0x1], 1 }

</bundles_post_ra>
